<compile_context>
chip_gen: v6e
topology: v6e:2x2x1
jax: 0.10.0
libtpu: 0.0.40
codegen_flags: <defaults>
</compile_context>

<pallas_src>
import functools

import jax
import jax.numpy as jnp
from jax import lax
from jax.experimental import pallas as pl
from jax.experimental.pallas import tpu as pltpu


_LANE_CHUNK = 2048  # inner compute chunk along the batch/lane axis (f32 hidden
                    # activations per chunk: (32, 2048) = 256 KiB)


def _round_up(n, m):
    return ((n + m - 1) // m) * m


def _mlp_kernel(xT_ref, w1_ref, b1_ref, w2_ref, b2_ref, oT_ref, *, approx_sigmoid):
    # xT_ref : (ch_inp, TB)   -- lane-dense: batch on the 128-lane axis
    # w1_ref : (H, ch_inp)       b1_ref : (H, 1)
    # w2_ref : (ch_out, H)       b2_ref : (ch_out, 1)
    # oT_ref : (ch_out, TB)
    w1 = w1_ref[...]                       # storage dtype feeds the MXU directly
    w2 = w2_ref[...]
    b1 = b1_ref[...].astype(jnp.float32)
    b2 = b2_ref[...].astype(jnp.float32)

    tb = xT_ref.shape[1]
    chunk = min(_LANE_CHUNK, tb)           # static; tb is a multiple of chunk
    n_chunks = tb // chunk

    def body(c, carry):
        start = pl.multiple_of(c * chunk, 128)
        x = xT_ref[:, pl.ds(start, chunk)]
        # Linear 1 (MXU, f32 accumulation) + bias -> (H, chunk)
        h = jnp.dot(w1, x, preferred_element_type=jnp.float32) + b1
        # SiLU: h * sigmoid(h)
        if approx_sigmoid:
            # 1 exp + 1 approx reciprocal, both on the EUP slot; add/mul on VPU.
            sig = pl.reciprocal(1.0 + jnp.exp(-h), approx=True)
        else:
            sig = jax.nn.sigmoid(h)
        h = h * sig
        # Linear 2 (MXU, f32 accumulation) + bias -> (ch_out, chunk)
        out = jnp.dot(w2, h, preferred_element_type=jnp.float32) + b2
        oT_ref[:, pl.ds(start, chunk)] = out.astype(oT_ref.dtype)
        return carry

    lax.fori_loop(0, n_chunks, body, 0)


def _choose_tile_b(B, tile_b):
    """Lane-axis DMA tile: big enough to amortize per-grid-step overhead,
    a multiple of the inner chunk, and <= ceil(B/2) so the grid keeps >=2 steps
    (lets v7x's two TensorCores split the batch)."""
    b128 = _round_up(B, 128)
    if b128 <= _LANE_CHUNK:
        return b128                                     # one block, one chunk
    half = _round_up((B + 1) // 2, _LANE_CHUNK)
    tb = min(_round_up(max(tile_b, _LANE_CHUNK), _LANE_CHUNK),
             _round_up(b128, _LANE_CHUNK),
             half)
    return max(_LANE_CHUNK, tb)


def mlp_forward_lane_dense(xT, w1, b1, w2, b2, *, tile_b=131072, approx_sigmoid=True):
    """Zero-transpose entry point.

    xT: (ch_inp, B) lane-dense activations (batch on the last / lane axis).
    Params in PyTorch nn.Linear layout: w1 (H, ch_inp), b1 (H,), w2 (ch_out, H),
    b2 (ch_out,).  Returns (ch_out, B) in xT.dtype.  bf16 xT/weights are fed to
    the MXU natively (f32 accumulation)."""
    ch_inp, B = xT.shape
    H, ch_inp_w = w1.shape
    ch_out, H_w = w2.shape
    assert ch_inp_w == ch_inp and H_w == H

    tb = _choose_tile_b(B, tile_b)
    grid = (pl.cdiv(B, tb),)                 # ragged last block handled by Pallas

    b1c = b1.reshape(H, 1)
    b2c = b2.reshape(ch_out, 1)

    itemsize = jnp.dtype(xT.dtype).itemsize
    chunk = min(_LANE_CHUNK, tb)
    # double-buffered x/out tiles + generous bound on per-chunk f32 temporaries
    vmem_needed = (2 * tb * (ch_inp + ch_out) * itemsize
                   + 8 * chunk * H * 4 + (1 << 20))
    vmem_limit = int(min(max(vmem_needed, 32 << 20), 64 << 20))

    cost = pl.CostEstimate(
        flops=2 * B * H * (ch_inp + ch_out) + 4 * B * H + B * ch_out,
        transcendentals=B * H,
        bytes_accessed=B * (ch_inp + ch_out) * itemsize
        + (H * ch_inp + ch_out * H + H + ch_out) * jnp.dtype(w1.dtype).itemsize,
    )

    kernel = functools.partial(_mlp_kernel, approx_sigmoid=approx_sigmoid)

    return pl.pallas_call(
        kernel,
        out_shape=jax.ShapeDtypeStruct((ch_out, B), xT.dtype),
        grid=grid,
        in_specs=[
            pl.BlockSpec((ch_inp, tb), lambda i: (0, i)),   # streamed, double-buffered
            pl.BlockSpec((H, ch_inp), lambda i: (0, 0)),    # params stay VMEM-resident
            pl.BlockSpec((H, 1), lambda i: (0, 0)),
            pl.BlockSpec((ch_out, H), lambda i: (0, 0)),
            pl.BlockSpec((ch_out, 1), lambda i: (0, 0)),
        ],
        out_specs=pl.BlockSpec((ch_out, tb), lambda i: (0, i)),
        compiler_params=pltpu.CompilerParams(
            dimension_semantics=("parallel",),   # batch tiles are independent
            vmem_limit_bytes=vmem_limit,
        ),
        cost_estimate=cost,
    )(xT, w1, b1c, w2, b2c)


def mlp_forward(x, w1, b1, w2, b2, **kwargs):
    """PyTorch-contract entry: x (B, ch_inp) -> (B, ch_out).

    NOTE: the two transposes here are standalone XLA ops (an extra HBM pass each
    way).  When the surrounding graph can produce/consume channels-first
    activations, call mlp_forward_lane_dense directly and skip them."""
    return mlp_forward_lane_dense(x.T, w1, b1, w2, b2, **kwargs).T


def init_params(key, ch_inp=8, hidden=32, ch_out=8):
    """Mirror nn.Linear default init U(-1/sqrt(fan_in), 1/sqrt(fan_in)),
    weights in PyTorch (out_features, in_features) layout."""
    k1, k2, k3, k4 = jax.random.split(key, 4)
    bound1 = 1.0 / jnp.sqrt(ch_inp)
    bound2 = 1.0 / jnp.sqrt(hidden)
    w1 = jax.random.uniform(k1, (hidden, ch_inp), jnp.float32, -bound1, bound1)
    b1 = jax.random.uniform(k2, (hidden,), jnp.float32, -bound1, bound1)
    w2 = jax.random.uniform(k3, (ch_out, hidden), jnp.float32, -bound2, bound2)
    b2 = jax.random.uniform(k4, (ch_out,), jnp.float32, -bound2, bound2)
    return w1, b1, w2, b2


def mlp_reference(x, w1, b1, w2, b2):
    h = x @ w1.T + b1
    h = h * jax.nn.sigmoid(h)
    return h @ w2.T + b2


if __name__ == "__main__":
    key = jax.random.PRNGKey(0)
    kx, kp, kx2 = jax.random.split(key, 3)

    ch_inp, hidden, ch_out = 8, 32, 8
    w1, b1, w2, b2 = init_params(kp, ch_inp, hidden, ch_out)

    # 1) Small batch (single partial block), exact sigmoid -> tight tolerance.
    B = 8
    x = jax.random.normal(kx, (B, ch_inp), jnp.float32)
    out = jax.block_until_ready(mlp_forward(x, w1, b1, w2, b2, approx_sigmoid=False))
    ref = mlp_reference(x, w1, b1, w2, b2)
    assert out.shape == (B, ch_out)
    assert jnp.allclose(out, ref, atol=1e-5, rtol=1e-5), "mismatch (small batch)"

    # 2) Multi-tile grid + ragged last block + approx-EUP SiLU (performance path).
    #    approx reciprocal adds ~1e-3-level deviation -> looser tolerance.
    B2 = 5000
    x2 = jax.random.normal(kx2, (B2, ch_inp), jnp.float32)
    out2 = jax.block_until_ready(
        mlp_forward(x2, w1, b1, w2, b2, tile_b=4096, approx_sigmoid=True))
    ref2 = mlp_reference(x2, w1, b1, w2, b2)
    assert out2.shape == (B2, ch_out)
    assert jnp.allclose(out2, ref2, atol=3e-2, rtol=3e-2), "mismatch (tiled/approx)"

    # 3) Zero-transpose lane-dense entry (preferred production path), exact sigmoid.
    out3 = jax.block_until_ready(
        mlp_forward_lane_dense(x2.T, w1, b1, w2, b2, approx_sigmoid=False))
    assert out3.shape == (ch_out, B2)
    assert jnp.allclose(out3.T, ref2, atol=1e-5, rtol=1e-5), "mismatch (lane-dense)"

    print("KERNEL_OK")
</pallas_src>

<mosaic_0001>
module attributes {stable_mosaic.version = 11 : i64} {
  func.func @_mlp_kernel(%arg0: i32, %arg1: memref<8x128xf32, #tpu.memory_space<vmem>>, %arg2: memref<32x8xf32, #tpu.memory_space<vmem>>, %arg3: memref<32x1xf32, #tpu.memory_space<vmem>>, %arg4: memref<8x32xf32, #tpu.memory_space<vmem>>, %arg5: memref<8x1xf32, #tpu.memory_space<vmem>>, %arg6: memref<8x128xf32, #tpu.memory_space<vmem>>) attributes {dimension_semantics = [#tpu.dimension_semantics<parallel>], iteration_bounds = array<i64: 1>, scalar_prefetch = 0 : i64, scratch_operands = 0 : i64, tpu.core_type = #tpu.core_type<tc>, window_params = [{transform_indices = @transform_0, window_bounds = array<i64: 8, 128>}, {pipeline_mode = #tpu.pipeline_mode<synchronous>, transform_indices = @transform_1, window_bounds = array<i64: 32, 8>}, {pipeline_mode = #tpu.pipeline_mode<synchronous>, transform_indices = @transform_2, window_bounds = array<i64: 32, 1>}, {pipeline_mode = #tpu.pipeline_mode<synchronous>, transform_indices = @transform_3, window_bounds = array<i64: 8, 32>}, {pipeline_mode = #tpu.pipeline_mode<synchronous>, transform_indices = @transform_4, window_bounds = array<i64: 8, 1>}, {transform_indices = @transform_5, window_bounds = array<i64: 8, 128>}]} {
    %c0 = arith.constant 0 : index
    %c0_0 = arith.constant 0 : index
    %0 = vector.load %arg2[%c0, %c0_0] : memref<32x8xf32, #tpu.memory_space<vmem>>, vector<32x8xf32>
    %c0_1 = arith.constant 0 : index
    %c0_2 = arith.constant 0 : index
    %1 = vector.load %arg4[%c0_1, %c0_2] : memref<8x32xf32, #tpu.memory_space<vmem>>, vector<8x32xf32>
    %c0_3 = arith.constant 0 : index
    %c0_4 = arith.constant 0 : index
    %2 = vector.load %arg3[%c0_3, %c0_4] : memref<32x1xf32, #tpu.memory_space<vmem>>, vector<32x1xf32>
    %c0_5 = arith.constant 0 : index
    %c0_6 = arith.constant 0 : index
    %3 = vector.load %arg5[%c0_5, %c0_6] : memref<8x1xf32, #tpu.memory_space<vmem>>, vector<8x1xf32>
    %c0_i32 = arith.constant 0 : i32
    %c128_i32 = arith.constant 128 : i32
    %4 = arith.muli %c0_i32, %c128_i32 : i32
    %5 = tpu.assume_multiple %4, 128 : i32
    %c0_7 = arith.constant 0 : index
    %6 = arith.index_cast %5 : i32 to index
    %7 = vector.load %arg1[%c0_7, %6] : memref<8x128xf32, #tpu.memory_space<vmem>>, vector<8x128xf32>
    %cst = arith.constant dense<0.000000e+00> : vector<32x128xf32>
    %8 = tpu.matmul %0, %7, %cst {dimension_numbers = #tpu.dot_dimension_numbers<[1], [0], [0], [1], [0, 0, 1, 1], [], []>} : vector<32x8xf32>, vector<8x128xf32>, vector<32x128xf32> -> vector<32x128xf32>
    %9 = vector.broadcast %2 : vector<32x1xf32> to vector<32x128xf32>
    %10 = arith.addf %8, %9 : vector<32x128xf32>
    %11 = arith.negf %10 : vector<32x128xf32>
    %12 = math.exp %11 : vector<32x128xf32>
    %cst_8 = arith.constant 1.000000e+00 : f32
    %13 = vector.broadcast %cst_8 : f32 to vector<32x128xf32>
    %14 = arith.addf %13, %12 : vector<32x128xf32>
    %15 = arith.divf %13, %14 : vector<32x128xf32>
    %16 = arith.mulf %10, %15 : vector<32x128xf32>
    %cst_9 = arith.constant dense<0.000000e+00> : vector<8x128xf32>
    %17 = tpu.matmul %1, %16, %cst_9 {dimension_numbers = #tpu.dot_dimension_numbers<[1], [0], [0], [1], [0, 0, 1, 1], [], []>} : vector<8x32xf32>, vector<32x128xf32>, vector<8x128xf32> -> vector<8x128xf32>
    %18 = vector.broadcast %3 : vector<8x1xf32> to vector<8x128xf32>
    %19 = arith.addf %17, %18 : vector<8x128xf32>
    %c0_10 = arith.constant 0 : index
    %20 = arith.index_cast %5 : i32 to index
    %21 = vector.load %arg6[%c0_10, %20] : memref<8x128xf32, #tpu.memory_space<vmem>>, vector<8x128xf32>
    tpu.vector_store %arg6[%c0_10, %20], %19 {strides = array<i32>} : memref<8x128xf32, #tpu.memory_space<vmem>>, vector<8x128xf32>,
    %c1_i32 = arith.constant 1 : i32
    return
  }
  func.func @transform_0(%arg0: i32) -> (i32, i32) {
    %c0_i32 = arith.constant 0 : i32
    %c0_i32_0 = arith.constant 0 : i32
    return %c0_i32, %arg0 : i32, i32
  }
  func.func @transform_1(%arg0: i32) -> (i32, i32) {
    %c0_i32 = arith.constant 0 : i32
    %c0_i32_0 = arith.constant 0 : i32
    %c0_i32_1 = arith.constant 0 : i32
    return %c0_i32, %c0_i32_0 : i32, i32
  }
  func.func @transform_2(%arg0: i32) -> (i32, i32) {
    %c0_i32 = arith.constant 0 : i32
    %c0_i32_0 = arith.constant 0 : i32
    %c0_i32_1 = arith.constant 0 : i32
    return %c0_i32, %c0_i32_0 : i32, i32
  }
  func.func @transform_3(%arg0: i32) -> (i32, i32) {
    %c0_i32 = arith.constant 0 : i32
    %c0_i32_0 = arith.constant 0 : i32
    %c0_i32_1 = arith.constant 0 : i32
    return %c0_i32, %c0_i32_0 : i32, i32
  }
  func.func @transform_4(%arg0: i32) -> (i32, i32) {
    %c0_i32 = arith.constant 0 : i32
    %c0_i32_0 = arith.constant 0 : i32
    %c0_i32_1 = arith.constant 0 : i32
    return %c0_i32, %c0_i32_0 : i32, i32
  }
  func.func @transform_5(%arg0: i32) -> (i32, i32) {
    %c0_i32 = arith.constant 0 : i32
    %c0_i32_0 = arith.constant 0 : i32
    return %c0_i32, %arg0 : i32, i32
  }
}

</mosaic_0001>

<bundles_post_ra>
// kernel: tpu_custom_call.1
= control target key start
LH: loop header
LB: loop body
LE: loop exit
PB: predicated region body
PF: predicated region fallthrough
CT: control target
= control target key end

     0   :  { %vm52_vm0 = vcmask 64512   ;;  %v354_v5 = vmov 0   ;;  %s428_s0 = inlined_call_operand.vmem [shape: f32[8,8], index: 0, kind: input, shape index: {}]   ;;  %s429_s1 = inlined_call_operand.vmem [shape: f32[32,8], index: 1, kind: input, shape index: {}]   ;;  %s430_s2 = inlined_call_operand.vmem [shape: f32[32,1], index: 2, kind: input, shape index: {}]   ;;  %s431_s3 = inlined_call_operand.vmem [shape: f32[8,32], index: 3, kind: input, shape index: {}]   ;;  %s432_s4 = inlined_call_operand.vmem [shape: f32[8,1], index: 4, kind: input, shape index: {}]   ;;  %s433_s5 = inlined_call_operand.hbm [shape: f32[8,8], index: 5, kind: output, shape index: {}]  }
   0x1   :  { %v31_v0 = vld [vmem:[%s428_s0] sm:$0xff]  ;;  %v22_v2 = vld [vmem:[%s429_s1 + $0x8] sm:$0xff]  ;;  %v23_v3 = vld [vmem:[%s429_s1 + $0x10] sm:$0xff]  ;;  %314 = vset.pattern.permute.xlu0 %v354_v5 }
   0x2   :  { %v21_v1 = vld [vmem:[%s429_s1] sm:$0xff]  ;;  %291 = vmatprep.subr.mxu0 %v31_v0  ;;  %v29_v4 = vld [vmem:[%s430_s2 + $0x18] sm:$0xff]  ;;  %v27_v6 = vld [vmem:[%s430_s2 + $0x8] sm:$0xff] }
   0x3   :  { %293 = vmatprep.mubr.msk.f32.mxu0 %vm52_vm0, %v21_v1  ;;  %292 = vmatpush3.msra.mxu0 %v31_v0 }
   0x4   :  { %294 = vmatmul.mubr.msk.f32.vlgmr.msra.gmra.mxu0 %vm52_vm0, %v22_v2  ;;  %49 = vperm.xlu0 %314, %v29_v4  }
   0x5   :  { %10 = vsyncpa [#allocation3], 0  ;;  %296 = vmatprep.mubr.msk.f32.mxu0 %vm52_vm0, %v23_v3  ;;  %v24_v7 = vld [vmem:[%s429_s1 + $0x18] sm:$0xff]  ;;  %315 = vset.pattern.permute.xlu1 %v354_v5  ;;  %v28_v8 = vld [vmem:[%s430_s2 + $0x10] sm:$0xff]  ;;  %v355_v11 = vmov 0.0   ;;  %vm356_vm1 = vmmov 0  }
   0x6   :  { %39 = vperm.xlu1 %315, %v27_v6   ;;  %v26_v9 = vld [vmem:[%s430_s2] sm:$0xff]  ;;  %299 = vmatprep.subr.mxu1 %v355_v11  ;;  %vm183_vm2 = vcmask 261120  }
   0x7   :  { %v30_v10 = vld [vmem:[%s432_s4] sm:$0xff]  ;;  %307 = vmatprep.mubr.msk.f32.mxu1 %vm356_vm1, %v355_v11  ;;  %s357_s4 = smov [#allocation2]  }
   0x8   :  { %297 = vmatmul.mubr.msk.f32.gmra.mxu0 %vm52_vm0, %v24_v7  ;;  %44 = vperm.xlu0 %314, %v28_v8   ;;  %v25_v44 = vld [vmem:[%s431_s3] sm:$0xff]  ;;  %s264_s12 = sshll.u32 %s357_s4, 4  ;;  %s265_s12 = int_to_ptr.vmem [resolvable:$true] %s264_s12 }
   0x9   :  { %s332_s13 = scalar_lea.vmem %s265_s12, 128  ;;  %p337_p1 = scmp.lt.s32.totalorder %s265_s12, %s265_s12 }
   0xa   :  { %34 = vperm.xlu1 %315, %v26_v9   ;;  %p333_p0 = scmp.ne.s32.totalorder %s265_s12, %s332_s13  ;;  %p338_p2 = scmp.lt.s32.totalorder %s332_s13, %s332_s13 }
   0xc   :  { %180 = vperm.xlu0 %314, %v30_v10   ;;  %p339_p3 = por %p338_p2, %p337_p1 }
   0xe   :  { %p340_p4 = pnand %p339_p3, %p333_p0 }
  0x7f   :  { %v50_v13 = vpop.permute.xlu0 %49 }
  0x81   :  { %v40_v12 = vpop.permute.xlu1 %39 }
  0x83   :  { %v45_v23 = vpop.permute.xlu0 %44 }
  0x85   :  { %v35_v15 = vpop.permute.xlu1 %34 }
  0x87   :  { %v181_v45 = vpop.permute.xlu0 %180 }
  0xc4   :  { %v295_v14 = vpop.f32.mrf.mxu0 }
  0xc5   :  { %v137_v16 = vadd.f32 %v295_v14, %v40_v12 }
  0xc6   :  { %v131_v17 = vpop.f32.mrf.mxu0 }
  0xc7   :  { %v277_v18 = vmul.f32 -1.442695, %v137_v16  ;;  %v132_v19 = vadd.f32 %v131_v17, %v35_v15 }
  0xc8   :  { %v298_v20 = vpop.f32.mrf.mxu0 }
  0xc9   :  { %v276_v21 = vmul.f32 -1.442695, %v132_v19  ;;  %v147_v22 = vadd.f32 %v298_v20, %v50_v13  ;;  %316 = vpow2.f32 %v277_v18 }
  0xca   :  { %v141_v24 = vpop.f32.mrf.mxu0 }
  0xcb   :  { %v279_v25 = vmul.f32 -1.442695, %v147_v22  ;;  %v142_v26 = vadd.f32 %v141_v24, %v45_v23  ;;  %318 = vpow2.f32 %v276_v21 }
  0xcd   :  { %320 = vpow2.f32 %v279_v25  ;;  %v278_v27 = vmul.f32 -1.442695, %v142_v26 }
  0xcf   :  { %322 = vpow2.f32 %v278_v27 }
  0xd6   :  { %v317_v28 = vpop.eup %316 }
  0xd7   :  { %v163_v31 = vadd.f32 1.0, %v317_v28 }
  0xd8   :  { %v319_v29 = vpop.eup %318 }
  0xd9   :  { %v162_v34 = vadd.f32 1.0, %v319_v29 }
  0xda   :  { %v321_v30 = vpop.eup %320 }
  0xdb   :  { %v165_v32 = vadd.f32 1.0, %v321_v30 }
  0xdc   :  { %v323_v33 = vpop.eup %322 }
  0xdd   :  { %324 = vrcp.f32 %v165_v32  ;;  %v164_v35 = vadd.f32 1.0, %v323_v33 }
  0xde   :  { %326 = vrcp.f32 %v163_v31 }
  0xdf   :  { %328 = vrcp.f32 %v164_v35 }
  0xe0   :  { %330 = vrcp.f32 %v162_v34 }
  0xea   :  { %v325_v36 = vpop.eup %324 }
  0xeb   :  { %v327_v37 = vpop.eup %326  ;;  %v177_v38 = vmul.f32 %v325_v36, %v147_v22 }
  0xec   :  { %v329_v39 = vpop.eup %328  ;;  %v175_v42 = vmul.f32 %v327_v37, %v137_v16 }
  0xed   :  { %v176_v40 = vmul.f32 %v329_v39, %v142_v26  ;;  %300 = vmatpush3.msra.mxu1 %v177_v38  ;;  %v331_v41 = vpop.eup %330 }
  0xee   :  { %301 = vmatprep.subr.mxu1 %v355_v11  ;;  %v174_v43 = vmul.f32 %v331_v41, %v132_v19 }
  0xef   :  { %302 = vmatpush3.msra.mxu1 %v176_v40 }
  0xf0   :  { %303 = vmatprep.subr.mxu1 %v355_v11 }
  0xf1   :  { %304 = vmatpush3.msra.mxu1 %v175_v42 }
  0xf2   :  { %305 = vmatprep.subr.mxu1 %v355_v11 }
  0xf3   :  { %306 = vmatpush3.msra.mxu1 %v174_v43 }
  0xf4   :  { %308 = vmatmul.mubr.msk.f32.vlgmr.msra.gmra.mxu1 %vm183_vm2, %v25_v44 }
 0x1b4   :  { %v253_v46 = vpop.f32.mrf.mxu1 }
 0x1b5   :  { %v254_v47 = vadd.f32 %v253_v46, %v181_v45 }
 0x1b6   :  { %v309_v48 = vpop.f32.mrf.mxu1 }
 0x1b7   :  { %257 = vst [vmem:[#allocation2] sm:$0xff] %v254_v47 }
 0x1b8   :  { %343 = shalt.err (!%p340_p4)
}
 0x1b9   :  { %267 = dma.vmem_to_hbm [thread:$0]  %s265_s12, 128, %s433_s5, [#allocation3]  }
 0x1ba   :  { %352 = dma.done.wait [#allocation3], 128  }
 0x1bb   :  { %353 = vsyncadd [#allocation3], 4294967168 }
 0x1bc   :  { %271 = vsyncpa [#allocation3], 1 }

</bundles_post_ra>
